<compile_context>
chip_gen: v7x
topology: tpu7x:2x2x1
jax: 0.10.0
libtpu: 0.0.40
codegen_flags: <defaults>
</compile_context>

<pallas_src>
import functools

import jax
import jax.numpy as jnp
from jax.experimental import pallas as pl
from jax.experimental.pallas import tpu as pltpu


def _semantic_attention_kernel(z_ref, w1_ref, b1_ref, w2_ref, out_ref, *,
                               num_head, hidden, matmul_dtype):
    N, M, C = z_ref.shape
    K = num_head * hidden

    z = z_ref[...]           # (N, M, C) f32
    w1 = w1_ref[...]         # (C, K)  head-major packed: cols [h*H, (h+1)*H)
    b1 = b1_ref[...]         # (1, K)
    w2 = w2_ref[...]         # (1, K)

    # --- all heads at once: ONE wide MXU matmul -------------------------------
    # (N*M, C) @ (C, num_head*H); f32 accumulation on the MXU.
    zf = z.reshape(N * M, C)
    hid = jnp.tanh(
        jnp.dot(zf.astype(matmul_dtype), w1.astype(matmul_dtype),
                preferred_element_type=jnp.float32) + b1)        # (N*M, K) f32

    # --- per-head scores: VPU mul against packed w2 + per-head lane reduce ----
    sw = hid * w2                                                # (N*M, K)
    s_cols = [
        jnp.sum(sw[:, h * hidden:(h + 1) * hidden], axis=1, keepdims=True)
        for h in range(num_head)
    ]                                                            # num_head x (N*M, 1)
    s_all = jnp.concatenate(s_cols, axis=1)                      # (N*M, num_head)

    # mean over N: reshape only this tiny (N*M, num_head) tensor.
    s_mean = jnp.sum(s_all.reshape(N, M, num_head), axis=0) * (1.0 / N)  # (M, num_head)

    # --- stable softmax over M per head, then average beta over heads ---------
    # (folds the 1/num_head scale into a tiny (M, 1) vector)
    s_mean = s_mean - jnp.max(s_mean, axis=0, keepdims=True)
    e = jnp.exp(s_mean)
    beta = e * pl.reciprocal(jnp.sum(e, axis=0, keepdims=True), approx=False)
    beta_avg = jnp.mean(beta, axis=1, keepdims=True)             # (M, 1)

    # --- single beta-weighted reduction over the semantic axis ----------------
    # out[n, c] = sum_m beta_avg[m] * z[n, m, c]
    out = jnp.sum(beta_avg[None, :, :] * z, axis=1)              # (N, C)

    # NOTE: out's last dim C maps to lanes; keep C a multiple of 128 in
    # production so the (N, C) stores are unmasked / lane-dense.  At C=32 this
    # is a single masked vst and negligible.
    out_ref[...] = out.astype(out_ref.dtype)


def semantic_attention(z, w1, b1, w2t, *, matmul_dtype=jnp.float32):
    """Pallas TPU forward of SemanticAttention.

    matmul_dtype=jnp.bfloat16 enables bf16 MXU inputs on v6e/v7x (f32 accum).
    """
    N, M, C = z.shape
    num_head, _, H = w1.shape
    K = num_head * H

    # Pack per-head params into single wide, head-major blocks so the kernel
    # performs ONE (N*M, C) @ (C, num_head*H) matmul instead of num_head
    # narrow ones.  (Tiny arrays; packed once in the wrapper.)
    w1_all = jnp.transpose(w1, (1, 0, 2)).reshape(C, K)   # (C, K)
    b1_all = b1.reshape(1, K)                             # (1, K)
    w2_all = w2t.reshape(1, K)                            # (1, K)

    kernel = functools.partial(
        _semantic_attention_kernel,
        num_head=num_head, hidden=H, matmul_dtype=matmul_dtype)

    vmem_spec = pl.BlockSpec(memory_space=pltpu.MemorySpace.VMEM)
    return pl.pallas_call(
        kernel,
        out_shape=jax.ShapeDtypeStruct((N, C), jnp.float32),
        in_specs=[vmem_spec, vmem_spec, vmem_spec, vmem_spec],
        out_specs=vmem_spec,
        compiler_params=pltpu.CompilerParams(
            vmem_limit_bytes=64 * 1024 * 1024),
    )(z, w1_all, b1_all, w2_all)


def semantic_attention_ref(z, w1, b1, w2t):
    """Pure-JAX reference mirroring the PyTorch forward."""
    num_head = w1.shape[0]
    N = z.shape[0]
    out = jnp.zeros((N, z.shape[-1]), jnp.float32)
    for h in range(num_head):
        hid = jnp.tanh(jnp.einsum("nmc,ch->nmh", z, w1[h]) + b1[h][0])
        s = jnp.einsum("nmh,h->nm", hid, w2t[h][0])[..., None]   # (N, M, 1)
        w = jnp.mean(s, axis=0)                                  # (M, 1)
        beta = jax.nn.softmax(w, axis=0)                         # (M, 1)
        out = out + jnp.sum(beta[None] * z, axis=1)
    return out / num_head


def _init_params(key, num_head, in_channel, hidden_size):
    """Deterministic init mimicking torch.nn.Linear defaults (+/- 1/sqrt(fan_in))."""
    k1, k2, k3 = jax.random.split(key, 3)
    bnd1 = 1.0 / (in_channel ** 0.5)
    bnd2 = 1.0 / (hidden_size ** 0.5)
    w1 = jax.random.uniform(k1, (num_head, in_channel, hidden_size),
                            jnp.float32, -bnd1, bnd1)
    b1 = jax.random.uniform(k2, (num_head, 1, hidden_size),
                            jnp.float32, -bnd1, bnd1)
    w2t = jax.random.uniform(k3, (num_head, 1, hidden_size),
                             jnp.float32, -bnd2, bnd2)
    return w1, b1, w2t


if __name__ == "__main__":
    N, M, C, H, NUM_HEAD = 8, 4, 32, 32, 2

    key = jax.random.PRNGKey(0)
    kz, kp = jax.random.split(key)
    z = jax.random.normal(kz, (N, M, C), jnp.float32)
    w1, b1, w2t = _init_params(kp, NUM_HEAD, C, H)

    out = semantic_attention(z, w1, b1, w2t)
    out = jax.block_until_ready(out)

    ref = semantic_attention_ref(z, w1, b1, w2t)
    assert out.shape == (N, C)
    assert jnp.allclose(out, ref, rtol=1e-5, atol=1e-5), "mismatch vs reference"

    print("KERNEL_OK")
</pallas_src>

<mosaic_0001>
module attributes {stable_mosaic.version = 11 : i64} {
  func.func @_semantic_attention_kernel(%arg0: memref<8x4x32xf32, #tpu.memory_space<vmem>>, %arg1: memref<32x64xf32, #tpu.memory_space<vmem>>, %arg2: memref<1x64xf32, #tpu.memory_space<vmem>>, %arg3: memref<1x64xf32, #tpu.memory_space<vmem>>, %arg4: memref<8x32xf32, #tpu.memory_space<vmem>>) attributes {dimension_semantics = [], scalar_prefetch = 0 : i64, scratch_operands = 0 : i64, tpu.core_type = #tpu.core_type<tc>} {
    %c0 = arith.constant 0 : index
    %c0_0 = arith.constant 0 : index
    %c0_1 = arith.constant 0 : index
    %0 = vector.load %arg0[%c0, %c0_0, %c0_1] : memref<8x4x32xf32, #tpu.memory_space<vmem>>, vector<8x4x32xf32>
    %c0_2 = arith.constant 0 : index
    %c0_3 = arith.constant 0 : index
    %1 = vector.load %arg1[%c0_2, %c0_3] : memref<32x64xf32, #tpu.memory_space<vmem>>, vector<32x64xf32>
    %c0_4 = arith.constant 0 : index
    %c0_5 = arith.constant 0 : index
    %2 = vector.load %arg2[%c0_4, %c0_5] : memref<1x64xf32, #tpu.memory_space<vmem>>, vector<1x64xf32>
    %c0_6 = arith.constant 0 : index
    %c0_7 = arith.constant 0 : index
    %3 = vector.load %arg3[%c0_6, %c0_7] : memref<1x64xf32, #tpu.memory_space<vmem>>, vector<1x64xf32>
    %4 = vector.shape_cast %0 : vector<8x4x32xf32> to vector<32x32xf32>
    %cst = arith.constant dense<0.000000e+00> : vector<32x64xf32>
    %5 = tpu.matmul %4, %1, %cst {dimension_numbers = #tpu.dot_dimension_numbers<[1], [0], [0], [1], [0, 0, 1, 1], [], []>} : vector<32x32xf32>, vector<32x64xf32>, vector<32x64xf32> -> vector<32x64xf32>
    %6 = vector.broadcast %2 : vector<1x64xf32> to vector<32x64xf32>
    %7 = arith.addf %5, %6 : vector<32x64xf32>
    %8 = math.tanh %7 : vector<32x64xf32>
    %9 = vector.broadcast %3 : vector<1x64xf32> to vector<32x64xf32>
    %10 = arith.mulf %8, %9 : vector<32x64xf32>
    %11 = vector.extract_strided_slice %10 {offsets = [0, 0], sizes = [32, 32], strides = [1, 1]} : vector<32x64xf32> to vector<32x32xf32>
    %cst_8 = arith.constant dense<0.000000e+00> : vector<32xf32>
    %12 = vector.multi_reduction <add>, %11, %cst_8 [1] : vector<32x32xf32> to vector<32xf32>
    %13 = vector.shape_cast %12 : vector<32xf32> to vector<32x1xf32>
    %14 = vector.extract_strided_slice %10 {offsets = [0, 32], sizes = [32, 32], strides = [1, 1]} : vector<32x64xf32> to vector<32x32xf32>
    %cst_9 = arith.constant dense<0.000000e+00> : vector<32xf32>
    %15 = vector.multi_reduction <add>, %14, %cst_9 [1] : vector<32x32xf32> to vector<32xf32>
    %16 = vector.shape_cast %15 : vector<32xf32> to vector<32x1xf32>
    %17 = tpu.concatenate %13, %16 in 1 : vector<32x1xf32>, vector<32x1xf32> -> vector<32x2xf32>
    %18 = vector.shape_cast %17 : vector<32x2xf32> to vector<8x4x2xf32>
    %cst_10 = arith.constant dense<0.000000e+00> : vector<4x2xf32>
    %19 = vector.multi_reduction <add>, %18, %cst_10 [0] : vector<8x4x2xf32> to vector<4x2xf32>
    %cst_11 = arith.constant 1.250000e-01 : f32
    %20 = vector.broadcast %cst_11 : f32 to vector<4x2xf32>
    %21 = arith.mulf %19, %20 : vector<4x2xf32>
    %cst_12 = arith.constant dense<0xFF800000> : vector<2xf32>
    %22 = vector.multi_reduction <maximumf>, %21, %cst_12 [0] : vector<4x2xf32> to vector<2xf32>
    %23 = vector.shape_cast %22 : vector<2xf32> to vector<1x2xf32>
    %24 = vector.broadcast %23 : vector<1x2xf32> to vector<4x2xf32>
    %25 = arith.subf %21, %24 : vector<4x2xf32>
    %26 = math.exp %25 : vector<4x2xf32>
    %cst_13 = arith.constant dense<0.000000e+00> : vector<2xf32>
    %27 = vector.multi_reduction <add>, %26, %cst_13 [0] : vector<4x2xf32> to vector<2xf32>
    %28 = vector.shape_cast %27 : vector<2xf32> to vector<1x2xf32>
    %29 = tpu.reciprocal %28 : vector<1x2xf32> -> vector<1x2xf32>
    %30 = vector.broadcast %29 : vector<1x2xf32> to vector<4x2xf32>
    %31 = arith.mulf %26, %30 : vector<4x2xf32>
    %cst_14 = arith.constant dense<0.000000e+00> : vector<4xf32>
    %32 = vector.multi_reduction <add>, %31, %cst_14 [1] : vector<4x2xf32> to vector<4xf32>
    %33 = vector.shape_cast %32 : vector<4xf32> to vector<4x1xf32>
    %cst_15 = arith.constant 2.000000e+00 : f32
    %34 = vector.broadcast %cst_15 : f32 to vector<4x1xf32>
    %35 = arith.divf %33, %34 : vector<4x1xf32>
    %36 = vector.shape_cast %35 : vector<4x1xf32> to vector<1x4x1xf32>
    %37 = vector.broadcast %36 : vector<1x4x1xf32> to vector<8x4x32xf32>
    %38 = arith.mulf %37, %0 : vector<8x4x32xf32>
    %cst_16 = arith.constant dense<0.000000e+00> : vector<8x32xf32>
    %39 = vector.multi_reduction <add>, %38, %cst_16 [1] : vector<8x4x32xf32> to vector<8x32xf32>
    %c0_17 = arith.constant 0 : index
    %c0_18 = arith.constant 0 : index
    %40 = vector.load %arg4[%c0_17, %c0_18] : memref<8x32xf32, #tpu.memory_space<vmem>>, vector<8x32xf32>
    tpu.vector_store %arg4[%c0_17, %c0_18], %39 {strides = array<i32>} : memref<8x32xf32, #tpu.memory_space<vmem>>, vector<8x32xf32>,
    return
  }
}

</mosaic_0001>

<bundles_post_ra>
// kernel: tpu_custom_call.1
= control target key start
LH: loop header
LB: loop body
LE: loop exit
PB: predicated region body
PF: predicated region fallthrough
CT: control target
= control target key end

     0   :  { %9 = vsyncpa [#allocation3], 0  ;;  %s761_s0 = inlined_call_operand.hbm [shape: f32[8,4,32], index: 0, kind: input, shape index: {}]   ;;  %s762_s1 = inlined_call_operand.hbm [shape: f32[32,64], index: 1, kind: input, shape index: {}]   ;;  %s763_s2 = inlined_call_operand.hbm [shape: f32[1,64], index: 2, kind: input, shape index: {}]   ;;  %s764_s3 = inlined_call_operand.hbm [shape: f32[1,64], index: 3, kind: input, shape index: {}]   ;;  %s765_s4 = inlined_call_operand.hbm [shape: f32[8,32], index: 4, kind: output, shape index: {}]  }
   0x1   :  { %10 = vsyncpa [#allocation6], 0 }
   0x2   :  { %11 = vsyncpa [#allocation9], 0 }
   0x3   :  { %12 = vsyncpa [#allocation4], 0  ;;  %s597_s15 = smov [#allocation5]   ;;  %s479_s19 = scalar_lea.hbm %s762_s1, 512 }
   0x4   :  { %s30_s16 = sshll.u32 %s597_s15, 4  ;;  %p480_p0 = scmp.ne.s32.totalorder %s762_s1, %s479_s19  ;;  %s31_s16 = int_to_ptr.vmem [resolvable:$true] %s30_s16 }
   0x5   :  { %p483_p1 = scmp.lt.u32.totalorder %s479_s19, %s762_s1 }
   0x7   :  { %p485_p2 = pnand %p483_p1, %p480_p0 }
   0x9   :  { %488 = shalt.err (!%p485_p2)
}
   0xa   :  { %s489_s24 = scalar_lea.vmem %s31_s16, 512  ;;  %p494_p4 = scmp.lt.s32.totalorder %s31_s16, %s31_s16 }
   0xb   :  { %p490_p3 = scmp.ne.s32.totalorder %s31_s16, %s489_s24  ;;  %p495_p5 = scmp.lt.s32.totalorder %s489_s24, %s489_s24 }
   0xd   :  { %p496_p6 = por %p495_p5, %p494_p4 }
   0xf   :  { %p497_p7 = pnand %p496_p6, %p490_p3 }
  0x11   :  { %500 = shalt.err (!%p497_p7)
}
  0x12   :  { %s598_s25 = smov 128   ;;  %s599_s26 = smov 8  }
  0x13   :  { %36 = dma.hbm_to_vmem [thread:$0]  %s762_s1, 512, %s31_s16, [#allocation6], %s598_s25, %s598_s25, %s599_s26  }
  0x14   :  { %s600_s29 = smov [#allocation2]   ;;  %s501_s7 = scalar_lea.hbm %s761_s0, 512 }
  0x15   :  { %s18_s30 = sshll.u32 %s600_s29, 4  ;;  %p502_p8 = scmp.ne.s32.totalorder %s761_s0, %s501_s7  ;;  %s19_s30 = int_to_ptr.vmem [resolvable:$true] %s18_s30 }
  0x16   :  { %p505_p9 = scmp.lt.u32.totalorder %s501_s7, %s761_s0 }
  0x18   :  { %p507_p10 = pnand %p505_p9, %p502_p8 }
  0x1a   :  { %510 = shalt.err (!%p507_p10)
}
  0x1b   :  { %s511_s12 = scalar_lea.vmem %s19_s30, 512  ;;  %p516_p12 = scmp.lt.s32.totalorder %s19_s30, %s19_s30 }
  0x1c   :  { %p512_p11 = scmp.ne.s32.totalorder %s19_s30, %s511_s12  ;;  %p517_p13 = scmp.lt.s32.totalorder %s511_s12, %s511_s12 }
  0x1e   :  { %p518_p0 = por %p517_p13, %p516_p12 }
  0x20   :  { %p519_p1 = pnand %p518_p0, %p512_p11 }
  0x22   :  { %522 = shalt.err (!%p519_p1)
}
  0x23   :  { %s601_s1 = smov 64   ;;  %s602_s13 = smov 4  }
  0x24   :  { %24 = dma.hbm_to_vmem [thread:$0]  %s761_s0, 512, %s19_s30, [#allocation3], %s601_s1, %s601_s1, %s602_s13  }
  0x25   :  { %s603_s16 = smov [#allocation7]   ;;  %s604_s18 = smov [#allocation8]  }
  0x26   :  { %s43_s17 = sshll.u32 %s603_s16, 4  ;;  %s53_s19 = sshll.u32 %s604_s18, 4  ;;  %s44_s17 = int_to_ptr.vmem [resolvable:$true] %s43_s17  ;;  %s54_s19 = int_to_ptr.vmem [resolvable:$true] %s53_s19 }
  0x27   :  { %s523_s22 = scalar_lea.hbm %s763_s2, 16 }
  0x28   :  { %p524_p2 = scmp.ne.s32.totalorder %s763_s2, %s523_s22  ;;  %p527_p3 = scmp.lt.u32.totalorder %s523_s22, %s763_s2 }
  0x2a   :  { %p529_p4 = pnand %p527_p3, %p524_p2 }
  0x2c   :  { %532 = shalt.err (!%p529_p4)
}
  0x2d   :  { %s533_s0 = scalar_lea.vmem %s44_s17, 16  ;;  %s537_s27 = scalar_lea.vmem %s44_s17, 32 }
  0x2e   :  { %p534_p5 = scmp.ne.s32.totalorder %s44_s17, %s533_s0  ;;  %p538_p6 = scmp.lt.s32.totalorder %s44_s17, %s44_s17 }
  0x2f   :  { %p539_p7 = scmp.lt.s32.totalorder %s537_s27, %s533_s0 }
  0x31   :  { %p540_p8 = por %p539_p7, %p538_p6 }
  0x33   :  { %p541_p9 = pnand %p540_p8, %p534_p5 }
  0x35   :  { %544 = shalt.err (!%p541_p9)
}
  0x36   :  { %46 = dma.hbm_to_vmem [thread:$0]  %s763_s2, 16, %s44_s17, [#allocation6]  }
  0x37   :  { %s545_s6 = scalar_lea.hbm %s764_s3, 16 }
  0x38   :  { %p546_p10 = scmp.ne.s32.totalorder %s764_s3, %s545_s6  ;;  %p549_p11 = scmp.lt.u32.totalorder %s545_s6, %s764_s3 }
  0x3a   :  { %p551_p12 = pnand %p549_p11, %p546_p10 }
  0x3c   :  { %554 = shalt.err (!%p551_p12)
}
  0x3d   :  { %s555_s11 = scalar_lea.vmem %s54_s19, 16  ;;  %s559_s12 = scalar_lea.vmem %s54_s19, 32 }
  0x3e   :  { %p556_p13 = scmp.ne.s32.totalorder %s54_s19, %s555_s11  ;;  %p560_p0 = scmp.lt.s32.totalorder %s54_s19, %s54_s19 }
  0x3f   :  { %p561_p1 = scmp.lt.s32.totalorder %s559_s12, %s555_s11 }
  0x41   :  { %p562_p2 = por %p561_p1, %p560_p0 }
  0x43   :  { %p563_p3 = pnand %p562_p2, %p556_p13 }
  0x45   :  { %566 = shalt.err (!%p563_p3)
}
  0x46   :  { %56 = dma.hbm_to_vmem [thread:$0]  %s764_s3, 16, %s54_s19, [#allocation9]  }
  0x47   :  { %589 = dma.done.wait [#allocation3], 512  }
  0x48   :  { %590 = vsyncadd [#allocation3], 4294966784 }
  0x49   :  { %591 = dma.done.wait [#allocation6], 528  }
  0x4a   :  { %592 = vsyncadd [#allocation6], 4294966768 }
  0x4b   :  { %593 = dma.done.wait [#allocation9], 16  }
  0x4c   :  { %594 = vsyncadd [#allocation9], 4294967280  ;;  %v77_v0 = vld [vmem:[#allocation5] sm:$0xff]  ;;  %v78_v1 = vld [vmem:[#allocation5 + $0x8] sm:$0xff]  ;;  %vm101_vm0 = vcmask 261120   ;;  %s605_s3 = smov 96  }
  0x4d   :  { %v79_v2 = vld [vmem:[#allocation5 + $0x10] sm:$0xff]  ;;  %v441_v3 = vpack.c.bf16 %v78_v1, %v77_v0  ;;  %v80_v4 = vld [vmem:[#allocation5 + $0x18] sm:$0xff]  ;;  %v680_v5 = vld [vmem:[#allocation2] sm:$0xf]  ;;  %vm249_vm1 = vcmask 7168   ;;  %vm266_vm2 = vcmask 11264  }
  0x4e   :  { %v682_v6 = vld [vmem:[#allocation2 + $0x4] sm:$0xf]  ;;  %v445_v7 = vpack.c.bf16 %v80_v4, %v79_v2  ;;  %v686_v9 = vld [vmem:[#allocation2 + $0x10] sm:$0xf]  ;;  %v688_v10 = vld [vmem:[#allocation2 + $0x8] sm:$0xf] }
  0x4f   :  { %v97_v8 = vcombine.low %v680_v5, %v682_v6  ;;  %442 = vmatprep.subr.bf16.mxu0 %v441_v3  ;;  %449 = vmatprep.subr.bf16.mxu1 %v441_v3  ;;  %v690_v11 = vld [vmem:[#allocation2 + $0x14] sm:$0xf]  ;;  %v692_v12 = vld [vmem:[#allocation2 + $0xc] sm:$0xf]  ;;  %v696_v14 = vld [vmem:[#allocation2 + $0x18] sm:$0xf] }
  0x50   :  { %444 = vmatpush3.bf16.msra.mxu0 %v441_v3  ;;  %451 = vmatpush3.bf16.msra.mxu1 %v441_v3  ;;  %v99_v13 = vcombine.low %v686_v9, %v690_v11  ;;  %v698_v15 = vld [vmem:[#allocation2 + $0x1c] sm:$0xf]  ;;  %v98_v16 = vcombine.low %v688_v10, %v692_v12  ;;  %v413_v18 = vld [vmem:[#allocation7] ss:$0 sm:$0xff]  ;;  %v418_v27 = vld [vmem:[#allocation8] ss:$0 sm:$0xff] }
  0x51   :  { %446 = vmatprep.subr.bf16.mxu0 %v445_v7  ;;  %450 = vmatprep.subr.bf16.mxu1 %v445_v7  ;;  %v100_v17 = vcombine.low %v696_v14, %v698_v15  ;;  %vm315_vm3 = vcmask 257024   ;;  %vm380_vm4 = vcmask 1041409   ;;  %vm382_vm5 = vcmask 1042434   ;;  %s606_s13 = smov [#allocation10]  }
  0x52   :  { %435 = vmatprep.mubr.msk.f32.mxu0 %vm101_vm0, %v97_v8  ;;  %438 = vmatprep.mubr.msk.f32.mxu1 %vm101_vm0, %v99_v13  ;;  %vm384_vm6 = vcmask 1043459   ;;  %vm386_vm7 = vcmask 1044484   ;;  %vm388_vm8 = vcmask 1045509   ;;  %vm390_vm9 = vcmask 1046534   ;;  %s402_s14 = sshll.u32 %s606_s13, 4  ;;  %s403_s14 = int_to_ptr.vmem [resolvable:$true] %s402_s14 }
  0x53   :  { %vm392_vm10 = vcmask 1047559   ;;  %s567_s15 = scalar_lea.vmem %s403_s14, 128  ;;  %p572_p5 = scmp.lt.s32.totalorder %s403_s14, %s403_s14 }
  0x54   :  { %448 = vmatpush3.bf16.msra.mxu0 %v445_v7  ;;  %452 = vmatpush3.bf16.msra.mxu1 %v445_v7  ;;  %p568_p4 = scmp.ne.s32.totalorder %s403_s14, %s567_s15  ;;  %p573_p6 = scmp.lt.s32.totalorder %s567_s15, %s567_s15 }
  0x56   :  { %p574_p7 = por %p573_p6, %p572_p5 }
  0x57   :  { %436 = vmatmul.mubr.msk.f32.vlgmr.msra.gmra.mrb[0].mxu0 %vm101_vm0, %v98_v16  ;;  %439 = vmatmul.mubr.msk.f32.vlgmr.msra.gmra.mrb[0].mxu1 %vm101_vm0, %v100_v17 }
  0x58   :  { %p575_p8 = pnand %p574_p7, %p568_p4 }
 0x12a   :  { %v437_v19 = vpop.f32.mrb[0].mxu0  ;;  %v440_v20 = vpop.f32.mrb[0].mxu1 }
 0x12b   :  { %v182_v21 = vadd.f32 %v437_v19, %v413_v18  ;;  %v176_v22 = vpop.f32.mrb[1].mxu0  ;;  %v192_v23 = vadd.f32 %v440_v20, %v413_v18  ;;  %v186_v24 = vpop.f32.mrb[1].mxu1 }
 0x12c   :  { %v177_v25 = vadd.f32 %v413_v18, %v176_v22  ;;  %v187_v26 = vadd.f32 %v413_v18, %v186_v24 }
 0x12d   :  { %467 = vtanh.f32 %v182_v21 }
 0x12e   :  { %469 = vtanh.f32 %v177_v25 }
 0x12f   :  { %471 = vtanh.f32 %v192_v23 }
 0x130   :  { %473 = vtanh.f32 %v187_v26 }
 0x137   :  { %v468_v28 = vpop.eup %467 }
 0x138   :  { %v470_v29 = vpop.eup %469  ;;  %v206_v34 = vmul.f32 %v468_v28, %v418_v27 }
 0x139   :  { %v472_v30 = vpop.eup %471  ;;  %v205_v31 = vmul.f32 %v470_v29, %v418_v27 }
 0x13a   :  { %v474_v32 = vpop.eup %473  ;;  %v208_v35 = vmul.f32 %v472_v30, %v418_v27  ;;  %v212_v37 = vsel %vm101_vm0, %v206_v34, 0.0 }
 0x13b   :  { %225 = vrot.lane.b32.xlu0 %v205_v31, %s605_s3  ;;  %v207_v33 = vmul.f32 %v474_v32, %v418_v27  ;;  %v209_v36 = vsel %vm101_vm0, %v205_v31, 0.0 }
 0x13c   :  { %v218_v45 = vsel %vm101_vm0, %v208_v35, 0.0 }
 0x13d   :  { %229 = vrot.lane.b32.xlu1 %v207_v33, %s605_s3  ;;  %v215_v42 = vsel %vm101_vm0, %v207_v33, 0.0 }
 0x13f   :  { %227 = vrot.lane.b32.xlu0 %v206_v34, %s605_s3 }
 0x141   :  { %231 = vrot.lane.b32.xlu1 %v208_v35, %s605_s3 }
 0x15e   :  { %210 = vadd.xlane.f32.xlu0 %v209_v36 }
 0x162   :  { %213 = vadd.xlane.f32.xlu0 %v212_v37 }
 0x1ad   :  { %v226_v38 = vpop.permute.xlu0 %225 }
 0x1ae   :  { %v237_v39 = vsel %vm101_vm0, %v226_v38, 0.0 }
 0x1af   :  { %238 = vadd.xlane.f32.xlu1 %v237_v39  ;;  %v230_v40 = vpop.permute.xlu1 %229 }
 0x1b0   :  { %v243_v44 = vsel %vm101_vm0, %v230_v40, 0.0 }
 0x1b1   :  { %v228_v41 = vpop.permute.xlu0 %227 }
 0x1b2   :  { %v240_v43 = vsel %vm101_vm0, %v228_v41, 0.0 }
 0x1b3   :  { %216 = vadd.xlane.f32.xlu1 %v215_v42  ;;  %241 = vadd.xlane.f32.xlu0 %v240_v43  ;;  %v232_v46 = vpop.permute.xlu1 %231 }
 0x1b4   :  { %v246_v47 = vsel %vm101_vm0, %v232_v46, 0.0 }
 0x1b7   :  { %219 = vadd.xlane.f32.xlu1 %v218_v45  ;;  %244 = vadd.xlane.f32.xlu0 %v243_v44 }
 0x1bb   :  { %247 = vadd.xlane.f32.xlu0 %v246_v47 }
 0x1eb   :  { %v211_v48 = vpop.xlane.xlu0 %210 }
 0x1ef   :  { %v214_v49 = vpop.xlane.xlu0 %213 }
 0x23c   :  { %v239_v50 = vpop.xlane.xlu1 %238 }
 0x23d   :  { %v250_v51 = vsel %vm249_vm1, %v211_v48, %v239_v50 }
 0x23e   :  { %v258_v52 = vcombine.high %v250_v51, %v250_v51  ;;  %v267_v53 = vsel %vm266_vm2, %v250_v51, 0.0 }
 0x240   :  { %v268_v54 = vsel %vm266_vm2, %v258_v52, 0.0  ;;  %v242_v55 = vpop.xlane.xlu0 %241  ;;  %v217_v58 = vpop.xlane.xlu1 %216 }
 0x241   :  { %v269_v56 = vadd.f32 %v268_v54, %v267_v53  ;;  %v251_v57 = vsel %vm249_vm1, %v214_v49, %v242_v55 }
 0x242   :  { %v259_v59 = vcombine.high %v251_v57, %v251_v57  ;;  %v270_v60 = vsel %vm266_vm2, %v251_v57, 0.0 }
 0x243   :  { %v271_v61 = vadd.f32 %v270_v60, %v269_v56 }
 0x244   :  { %v272_v62 = vsel %vm266_vm2, %v259_v59, 0.0  ;;  %v245_v63 = vpop.xlane.xlu0 %244  ;;  %v220_v7 = vpop.xlane.xlu1 %219 }
 0x245   :  { %v273_v0 = vadd.f32 %v272_v62, %v271_v61  ;;  %v252_v1 = vsel %vm249_vm1, %v217_v58, %v245_v63 }
 0x246   :  { %v260_v2 = vcombine.high %v252_v1, %v252_v1  ;;  %v274_v3 = vsel %vm266_vm2, %v252_v1, 0.0 }
 0x247   :  { %v275_v4 = vadd.f32 %v274_v3, %v273_v0 }
 0x248   :  { %v276_v8 = vsel %vm266_vm2, %v260_v2, 0.0  ;;  %v248_v13 = vpop.xlane.xlu0 %247 }
 0x249   :  { %v277_v16 = vadd.f32 %v276_v8, %v275_v4  ;;  %v253_v17 = vsel %vm249_vm1, %v220_v7, %v248_v13 }
 0x24a   :  { %v261_v18 = vcombine.high %v253_v17, %v253_v17  ;;  %v278_v19 = vsel %vm266_vm2, %v253_v17, 0.0 }
 0x24b   :  { %v279_v20 = vadd.f32 %v278_v19, %v277_v16 }
 0x24c   :  { %v280_v21 = vsel %vm266_vm2, %v261_v18, 0.0 }
 0x24d   :  { %v281_v22 = vadd.f32 %v280_v21, %v279_v20 }
 0x24f   :  { %v282_v23 = vmul.f32 0.125, %v281_v22 }
 0x251   :  { %v283_v24 = vsel %vm266_vm2, %v282_v23, -inf }
 0x252   :  { %v284_v25 = vrot.slane %v283_v24, 4 }
 0x254   :  { %v285_v26 = vmax.f32 %v283_v24, %v284_v25 }
 0x256   :  { %v286_v27 = vrot.slane %v285_v26, 2 }
 0x258   :  { %v287_v28 = vmax.f32 %v285_v26, %v286_v27 }
 0x25a   :  { %v288_v29 = vrot.slane %v287_v28, 1 }
 0x25c   :  { %v289_v30 = vmax.f32 %v287_v28, %v288_v29 }
 0x25e   :  { %v290_v31 = vsub.f32 %v282_v23, %v289_v30 }
 0x260   :  { %v291_v32 = vmul.f32 1.442695, %v290_v31 }
 0x262   :  { %475 = vpow2.f32 %v291_v32 }
 0x26c   :  { %v476_v33 = vpop.eup %475 }
 0x26d   :  { %v293_v34 = vsel %vm266_vm2, %v476_v33, 0.0 }
 0x26e   :  { %v294_v35 = vrot.slane %v293_v34, 4 }
 0x270   :  { %v295_v36 = vadd.f32 %v294_v35, %v293_v34 }
 0x272   :  { %v296_v37 = vrot.slane %v295_v36, 2 }
 0x274   :  { %v297_v38 = vadd.f32 %v296_v37, %v295_v36 }
 0x276   :  { %v298_v39 = vrot.slane %v297_v38, 1 }
 0x278   :  { %v299_v40 = vadd.f32 %v298_v39, %v297_v38 }
 0x27a   :  { %477 = vrcp.f32 %v299_v40 }
 0x284   :  { %v478_v41 = vpop.eup %477 }
 0x285   :  { %v301_v42 = vmul.f32 %v478_v41, %v476_v33 }
 0x287   :  { %v302_v43 = vsel %vm266_vm2, %v301_v42, 0.0 }
 0x288   :  { %303 = vadd.xlane.f32.xlu1 %v302_v43 }
 0x315   :  { %v304_v44 = vpop.xlane.xlu1 %303 }
 0x316   :  { %v306_v45 = vmul.f32 0.5, %v304_v44 }
 0x318   :  { %v307_v46 = vmul.f32 %v306_v45, %v680_v5  ;;  %v308_v47 = vmul.f32 %v306_v45, %v682_v6  ;;  %v309_v48 = vmul.f32 %v306_v45, %v688_v10  ;;  %v310_v49 = vmul.f32 %v306_v45, %v692_v12 }
 0x319   :  { %v311_v50 = vmul.f32 %v306_v45, %v686_v9  ;;  %v312_v51 = vmul.f32 %v306_v45, %v690_v11  ;;  %v313_v52 = vmul.f32 %v306_v45, %v696_v14  ;;  %v314_v53 = vmul.f32 %v306_v45, %v698_v15 }
 0x31a   :  { %v316_v54 = vsel %vm315_vm3, %v307_v46, 0.0  ;;  %v323_v55 = vsel %vm315_vm3, %v308_v47, 0.0  ;;  %v330_v5 = vsel %vm315_vm3, %v309_v48, 0.0  ;;  %v337_v6 = vsel %vm315_vm3, %v310_v49, 0.0 }
 0x31b   :  { %v317_v56 = vrot.slane %v316_v54, 4  ;;  %v324_v10 = vrot.slane %v323_v55, 4  ;;  %v331_v57 = vrot.slane %v330_v5, 4  ;;  %v338_v12 = vrot.slane %v337_v6, 4 }
 0x31c   :  { %v344_v9 = vsel %vm315_vm3, %v311_v50, 0.0  ;;  %v351_v11 = vsel %vm315_vm3, %v312_v51, 0.0  ;;  %v358_v14 = vsel %vm315_vm3, %v313_v52, 0.0  ;;  %v365_v15 = vsel %vm315_vm3, %v314_v53, 0.0 }
 0x31d   :  { %v318_v58 = vadd.f32 %v317_v56, %v316_v54  ;;  %v325_v59 = vadd.f32 %v324_v10, %v323_v55  ;;  %v332_v60 = vadd.f32 %v331_v57, %v330_v5  ;;  %v339_v61 = vadd.f32 %v338_v12, %v337_v6 }
 0x31e   :  { %v345_v62 = vrot.slane %v344_v9, 4  ;;  %v352_v63 = vrot.slane %v351_v11, 4  ;;  %v359_v0 = vrot.slane %v358_v14, 4  ;;  %v366_v1 = vrot.slane %v365_v15, 4 }
 0x31f   :  { %v319_v2 = vrot.slane %v318_v58, 2  ;;  %v326_v3 = vrot.slane %v325_v59, 2  ;;  %v333_v4 = vrot.slane %v332_v60, 2  ;;  %v340_v7 = vrot.slane %v339_v61, 2 }
 0x320   :  { %v346_v8 = vadd.f32 %v345_v62, %v344_v9  ;;  %v353_v13 = vadd.f32 %v352_v63, %v351_v11  ;;  %v360_v16 = vadd.f32 %v359_v0, %v358_v14  ;;  %v367_v17 = vadd.f32 %v366_v1, %v365_v15 }
 0x321   :  { %v320_v18 = vadd.f32 %v319_v2, %v318_v58  ;;  %v327_v19 = vadd.f32 %v326_v3, %v325_v59  ;;  %v334_v20 = vadd.f32 %v333_v4, %v332_v60  ;;  %v341_v21 = vadd.f32 %v340_v7, %v339_v61 }
 0x322   :  { %v347_v22 = vrot.slane %v346_v8, 2  ;;  %v354_v23 = vrot.slane %v353_v13, 2  ;;  %v361_v24 = vrot.slane %v360_v16, 2  ;;  %v368_v25 = vrot.slane %v367_v17, 2 }
 0x323   :  { %v321_v26 = vrot.slane %v320_v18, 1  ;;  %v328_v27 = vrot.slane %v327_v19, 1  ;;  %v335_v28 = vrot.slane %v334_v20, 1  ;;  %v342_v29 = vrot.slane %v341_v21, 1 }
 0x324   :  { %v348_v30 = vadd.f32 %v347_v22, %v346_v8  ;;  %v355_v31 = vadd.f32 %v354_v23, %v353_v13  ;;  %v362_v32 = vadd.f32 %v361_v24, %v360_v16  ;;  %v369_v33 = vadd.f32 %v368_v25, %v367_v17 }
 0x325   :  { %v322_v34 = vadd.f32 %v321_v26, %v320_v18  ;;  %v329_v35 = vadd.f32 %v328_v27, %v327_v19  ;;  %v336_v36 = vadd.f32 %v335_v28, %v334_v20  ;;  %v343_v41 = vadd.f32 %v342_v29, %v341_v21 }
 0x326   :  { %v349_v37 = vrot.slane %v348_v30, 1  ;;  %v356_v38 = vrot.slane %v355_v31, 1  ;;  %v363_v39 = vrot.slane %v362_v32, 1  ;;  %v370_v42 = vrot.slane %v369_v33, 1 }
 0x327   :  { %v381_v40 = vsel %vm380_vm4, %v329_v35, %v322_v34 }
 0x328   :  { %v350_v43 = vadd.f32 %v349_v37, %v348_v30  ;;  %v383_v44 = vsel %vm382_vm5, %v336_v36, %v381_v40  ;;  %v357_v45 = vadd.f32 %v356_v38, %v355_v31  ;;  %v364_v47 = vadd.f32 %v363_v39, %v362_v32 }
 0x329   :  { %v385_v46 = vsel %vm384_vm6, %v343_v41, %v383_v44  ;;  %v371_v49 = vadd.f32 %v370_v42, %v369_v33 }
 0x32a   :  { %v387_v48 = vsel %vm386_vm7, %v350_v43, %v385_v46 }
 0x32b   :  { %v389_v50 = vsel %vm388_vm8, %v357_v45, %v387_v48 }
 0x32c   :  { %v391_v51 = vsel %vm390_vm9, %v364_v47, %v389_v50 }
 0x32d   :  { %v393_v52 = vsel %vm392_vm10, %v371_v49, %v391_v51 }
 0x32e   :  { %395 = vst.msk [vmem:[#allocation10] sm:$0xff] %vm101_vm0, %v393_v52 }
 0x32f   :  { %578 = shalt.err (!%p575_p8)
}
 0x330   :  { %s579_s18 = scalar_lea.hbm %s765_s4, 128 }
 0x331   :  { %p580_p9 = scmp.ne.s32.totalorder %s765_s4, %s579_s18  ;;  %p583_p10 = scmp.lt.u32.totalorder %s579_s18, %s765_s4 }
 0x333   :  { %p585_p11 = pnand %p583_p10, %p580_p9 }
 0x335   :  { %588 = shalt.err (!%p585_p11)
}
 0x336   :  { %405 = dma.vmem_to_hbm [thread:$0]  %s403_s14, 128, %s765_s4, [#allocation4]  }
 0x337   :  { %595 = dma.done.wait [#allocation4], 128  }
 0x338   :  { %596 = vsyncadd [#allocation4], 4294967168 }
 0x339   :  { %409 = vsyncpa [#allocation3], 1 }
 0x33a   :  { %410 = vsyncpa [#allocation6], 1 }
 0x33b   :  { %411 = vsyncpa [#allocation9], 1 }
 0x33c   :  { %412 = vsyncpa [#allocation4], 1 }

</bundles_post_ra>
